<compile_context>
chip_gen: v7x
topology: tpu7x:2x2x1
jax: 0.10.0
libtpu: 0.0.40
codegen_flags: <defaults>
</compile_context>

<pallas_src>
import functools
import math

import jax
import jax.numpy as jnp
from jax import lax
from jax.experimental import pallas as pl
from jax.experimental.pallas import tpu as pltpu


# Odd 32-bit mixing constants (lowbias32 / murmur-style finalizer) — fallback path only.
_GOLDEN = 0x9E3779B9
_MIX_A = 0x7FEB352D
_MIX_B = 0x846CA68B
_SEED_MUL = 0x85EBCA6B
_SEED_ADD = 0xC2B2AE35
_TWO24 = 16777216.0


def _mix32(v):
    """lowbias32 avalanche: uint32 -> well-mixed uint32 (portable jnp ops only)."""
    v = v ^ (v >> jnp.uint32(16))
    v = v * jnp.uint32(_MIX_A)
    v = v ^ (v >> jnp.uint32(15))
    v = v * jnp.uint32(_MIX_B)
    v = v ^ (v >> jnp.uint32(16))
    return v


def _poisson_kernel(seed_ref, x_ref, o_ref, *, tt_steps, use_hw_rng):
    """One (row_tile, time_group) grid point: o[tt] = Bernoulli(p = x), tt in [0, tt_steps).

    seed_ref: (1,) int32 scalar-prefetch seed (SMEM)
    x_ref:    (TM, K) float probabilities in [0, 1]  (VMEM, resident across the T axis)
    o_ref:    (Tt, TM, K) float spikes for tt_steps consecutive time steps
    """
    m = pl.program_id(0)      # row-tile index
    tg = pl.program_id(1)     # time-group index
    tm, k = x_ref.shape

    # t-invariant threshold, hoisted out of the time loop.  Done in f32 so the 24-bit
    # granularity is not limited by the input dtype.
    thresh = (x_ref[...].astype(jnp.float32) * jnp.float32(_TWO24)).astype(jnp.int32)

    if use_hw_rng:
        # Hardware PRNG: reseed per (seed, row-tile, time-group) so parallel cores /
        # grid points never share a stream; each prng_random_bits call advances state.
        pltpu.prng_seed(seed_ref[0], m, tg)
        for tt in range(tt_steps):
            bits = pltpu.bitcast(pltpu.prng_random_bits((tm, k)), jnp.uint32)
            u24 = (bits >> jnp.uint32(8)).astype(jnp.int32)      # uniform in [0, 2^24)
            o_ref[tt] = (u24 < thresh).astype(o_ref.dtype)
    else:
        # Portable counter-based fallback (interpret mode / non-TPU backends).
        # All t-invariant per-element work (iotas, counter spread) is hoisted here.
        row = lax.broadcasted_iota(jnp.uint32, (tm, k), 0)
        col = lax.broadcasted_iota(jnp.uint32, (tm, k), 1)
        ctr = (m.astype(jnp.uint32) * jnp.uint32(tm) + row) * jnp.uint32(k) + col
        ctr = ctr * jnp.uint32(_GOLDEN)
        skey = _mix32(seed_ref[0].astype(jnp.uint32) * jnp.uint32(_SEED_MUL)
                      + jnp.uint32(_SEED_ADD))
        for tt in range(tt_steps):
            t = (tg * tt_steps + tt).astype(jnp.uint32)
            tkey = _mix32(t * jnp.uint32(_GOLDEN) + skey)
            bits = _mix32(ctr + tkey)
            u24 = (bits >> jnp.uint32(8)).astype(jnp.int32)
            o_ref[tt] = (u24 < thresh).astype(o_ref.dtype)


def _pick_lane_width(total):
    """Lane-dense K (multiple of 128); prefer M >= 8.  Returns (K, pad)."""
    for cand in (4096, 2048, 1024, 512, 256, 128):
        if total % cand == 0 and total // cand >= 8:
            return cand, 0
    for cand in (4096, 2048, 1024, 512, 256, 128):
        if total % cand == 0:
            return cand, 0
    K = 128
    return K, (-total) % K


def _pick_row_tile(M, K, itemsize, target_bytes=2 << 20):
    """Row-tile TM: ~target_bytes, a multiple-of-8 divisor of M when possible."""
    target_rows = max(8, target_bytes // (K * itemsize))
    if M <= target_rows:
        return M
    best = None
    for d in range(8, int(target_rows) + 1, 8):
        if M % d == 0:
            best = d
    if best is not None:
        return best
    # No clean divisor: ragged last tile (Pallas masks the partial stores correctly).
    return (int(target_rows) // 8) * 8


def poisson_encoder_wrapper(x, time_steps, seed=0, use_hw_rng=None):
    """Pallas equivalent of PoissonEncoderWrapper.forward.

    x: float array with values in [0, 1] (e.g. (N, C, H, W)).
    Returns: (time_steps, *x.shape) array of {0, 1} spikes, dtype = x.dtype.
    """
    if use_hw_rng is None:
        use_hw_rng = jax.default_backend() == "tpu"

    orig_shape = tuple(x.shape)
    total = int(math.prod(orig_shape))
    flat = x.reshape(total)

    # ---- lane-dense 2-D layout
    K, pad = _pick_lane_width(total)
    if pad:
        flat = jnp.pad(flat, (0, pad))
    M = (total + pad) // K
    x2d = flat.reshape(M, K)
    itemsize = x.dtype.itemsize

    # ---- row tile (~2 MiB, divisor of M when possible)
    TM = _pick_row_tile(M, K, itemsize)
    tile_bytes = TM * K * itemsize

    # ---- time-step grouping: Tt consecutive steps per grid point, budget-limited
    budget_bytes = 40 << 20          # double-buffered working-set cap (safe on v7x's 64 MiB)
    Tt = 1
    for cand in (8, 4, 2, 1):
        if time_steps % cand == 0 and 2 * (cand + 1) * tile_bytes <= budget_bytes:
            Tt = cand
            break
    num_t_groups = time_steps // Tt

    # ---- v7x megacore: if the grid collapses to a single point, split the row tile
    # so both TensorCores get a "parallel" row tile (only when a clean divisor exists).
    if num_t_groups < 2 and pl.cdiv(M, TM) < 2 and M >= 16:
        half = None
        for d in range(8, M // 2 + 1, 8):
            if M % d == 0:
                half = d
        if half is not None:
            TM = half
            tile_bytes = TM * K * itemsize
    num_row_tiles = pl.cdiv(M, TM)

    # ---- explicit VMEM budget: double-buffered input tile + Tt-grouped output block
    working = 2 * tile_bytes + 2 * Tt * tile_bytes
    vmem_limit = int(min(48 << 20, max(32 << 20, working + (4 << 20))))

    seed_arr = jnp.asarray(seed, dtype=jnp.int32).reshape(1)
    kernel = functools.partial(_poisson_kernel, tt_steps=Tt, use_hw_rng=use_hw_rng)

    out3d = pl.pallas_call(
        kernel,
        out_shape=jax.ShapeDtypeStruct((time_steps, M, K), x.dtype),
        grid_spec=pltpu.PrefetchScalarGridSpec(
            num_scalar_prefetch=1,
            grid=(num_row_tiles, num_t_groups),
            in_specs=[
                # x tile block-index constant along the time-group axis -> DMA'd once
                # per row tile and kept resident while Tt spike slabs stream out.
                pl.BlockSpec((TM, K), lambda m, tg, seed: (m, 0)),
            ],
            out_specs=pl.BlockSpec((Tt, TM, K), lambda m, tg, seed: (tg, m, 0)),
        ),
        compiler_params=pltpu.CompilerParams(
            # Time steps are independent (no accumulator) and row tiles are
            # independent -> both axes parallel so v7x can shard across its 2 TCs.
            dimension_semantics=("parallel", "parallel"),
            vmem_limit_bytes=vmem_limit,
        ),
    )(seed_arr, x2d)

    out = out3d.reshape(time_steps, M * K)
    if pad:
        out = out[:, :total]
    return out.reshape((time_steps,) + orig_shape)


if __name__ == "__main__":
    key = jax.random.PRNGKey(0)
    N, C, H, W = 2, 4, 16, 16
    time_steps = 8
    # pixel intensities in [0, 1) acting as Bernoulli spike probabilities
    x = jax.random.uniform(key, (N, C, H, W), dtype=jnp.float32)

    out = poisson_encoder_wrapper(x, time_steps, seed=0)
    out = jax.block_until_ready(out)

    # shape / dtype match torch.stack of T encodings
    assert out.shape == (time_steps, N, C, H, W)
    assert out.dtype == x.dtype
    # spikes are strictly binary
    assert bool(jnp.all((out == 0.0) | (out == 1.0)))
    # empirical firing rate tracks the input intensities (loose statistical check)
    assert abs(float(out.mean()) - float(x.mean())) < 0.1
    # different time steps produce different (independent) spike patterns
    assert bool(jnp.any(out[0] != out[1]))

    print("KERNEL_OK")
</pallas_src>

<mosaic_0001>
module attributes {stable_mosaic.version = 11 : i64} {
  func.func @_poisson_kernel(%arg0: i32, %arg1: i32, %arg2: memref<1xi32, #tpu.memory_space<smem>>, %arg3: memref<8x256xf32, #tpu.memory_space<vmem>>, %arg4: memref<8x8x256xf32, #tpu.memory_space<vmem>>) attributes {dimension_semantics = [#tpu.dimension_semantics<parallel>, #tpu.dimension_semantics<parallel>], iteration_bounds = array<i64: 1, 1>, scalar_prefetch = 1 : i64, scratch_operands = 0 : i64, tpu.core_type = #tpu.core_type<tc>, window_params = [{transform_indices = @transform_0, window_bounds = array<i64: 8, 256>}, {transform_indices = @transform_1, window_bounds = array<i64: 8, 8, 256>}]} {
    %c0 = arith.constant 0 : index
    %c0_0 = arith.constant 0 : index
    %0 = vector.load %arg3[%c0, %c0_0] : memref<8x256xf32, #tpu.memory_space<vmem>>, vector<8x256xf32>
    %cst = arith.constant 0x4B800000 : f32
    %1 = vector.broadcast %cst : f32 to vector<8x256xf32>
    %2 = arith.mulf %0, %1 : vector<8x256xf32>
    %3 = arith.fptosi %2 : vector<8x256xf32> to vector<8x256xi32>
    %4 = tpu.iota {dimensions = array<i32: 0>} : vector<8x256xi32>
    %5 = tpu.iota {dimensions = array<i32: 1>} : vector<8x256xi32>
    %c8_i32 = arith.constant 8 : i32
    %6 = arith.muli %arg0, %c8_i32 : i32
    %7 = vector.broadcast %6 : i32 to vector<8x256xi32>
    %8 = arith.addi %7, %4 : vector<8x256xi32>
    %c256_i32 = arith.constant 256 : i32
    %9 = vector.broadcast %c256_i32 : i32 to vector<8x256xi32>
    %10 = arith.muli %8, %9 : vector<8x256xi32>
    %11 = arith.addi %10, %5 : vector<8x256xi32>
    %c-1640531527_i32 = arith.constant -1640531527 : i32
    %12 = vector.broadcast %c-1640531527_i32 : i32 to vector<8x256xi32>
    %13 = arith.muli %11, %12 : vector<8x256xi32>
    %c0_1 = arith.constant 0 : index
    %14 = memref.load %arg2[%c0_1] : memref<1xi32, #tpu.memory_space<smem>>
    %c-2048144789_i32 = arith.constant -2048144789 : i32
    %15 = arith.muli %14, %c-2048144789_i32 : i32
    %c-1028477387_i32 = arith.constant -1028477387 : i32
    %16 = arith.addi %15, %c-1028477387_i32 : i32
    %c16_i32 = arith.constant 16 : i32
    %17 = arith.shrui %16, %c16_i32 : i32
    %18 = arith.xori %16, %17 : i32
    %c2146121005_i32 = arith.constant 2146121005 : i32
    %19 = arith.muli %18, %c2146121005_i32 : i32
    %c15_i32 = arith.constant 15 : i32
    %20 = arith.shrui %19, %c15_i32 : i32
    %21 = arith.xori %19, %20 : i32
    %c-2073254261_i32 = arith.constant -2073254261 : i32
    %22 = arith.muli %21, %c-2073254261_i32 : i32
    %c16_i32_2 = arith.constant 16 : i32
    %23 = arith.shrui %22, %c16_i32_2 : i32
    %24 = arith.xori %22, %23 : i32
    %c8_i32_3 = arith.constant 8 : i32
    %25 = arith.muli %arg1, %c8_i32_3 : i32
    %c0_i32 = arith.constant 0 : i32
    %26 = arith.addi %25, %c0_i32 : i32
    %c-1640531527_i32_4 = arith.constant -1640531527 : i32
    %27 = arith.muli %26, %c-1640531527_i32_4 : i32
    %28 = arith.addi %27, %24 : i32
    %c16_i32_5 = arith.constant 16 : i32
    %29 = arith.shrui %28, %c16_i32_5 : i32
    %30 = arith.xori %28, %29 : i32
    %c2146121005_i32_6 = arith.constant 2146121005 : i32
    %31 = arith.muli %30, %c2146121005_i32_6 : i32
    %c15_i32_7 = arith.constant 15 : i32
    %32 = arith.shrui %31, %c15_i32_7 : i32
    %33 = arith.xori %31, %32 : i32
    %c-2073254261_i32_8 = arith.constant -2073254261 : i32
    %34 = arith.muli %33, %c-2073254261_i32_8 : i32
    %c16_i32_9 = arith.constant 16 : i32
    %35 = arith.shrui %34, %c16_i32_9 : i32
    %36 = arith.xori %34, %35 : i32
    %37 = vector.broadcast %36 : i32 to vector<8x256xi32>
    %38 = arith.addi %13, %37 : vector<8x256xi32>
    %c16_i32_10 = arith.constant 16 : i32
    %39 = vector.broadcast %c16_i32_10 : i32 to vector<8x256xi32>
    %40 = arith.shrui %38, %39 : vector<8x256xi32>
    %41 = arith.xori %38, %40 : vector<8x256xi32>
    %c2146121005_i32_11 = arith.constant 2146121005 : i32
    %42 = vector.broadcast %c2146121005_i32_11 : i32 to vector<8x256xi32>
    %43 = arith.muli %41, %42 : vector<8x256xi32>
    %c15_i32_12 = arith.constant 15 : i32
    %44 = vector.broadcast %c15_i32_12 : i32 to vector<8x256xi32>
    %45 = arith.shrui %43, %44 : vector<8x256xi32>
    %46 = arith.xori %43, %45 : vector<8x256xi32>
    %c-2073254261_i32_13 = arith.constant -2073254261 : i32
    %47 = vector.broadcast %c-2073254261_i32_13 : i32 to vector<8x256xi32>
    %48 = arith.muli %46, %47 : vector<8x256xi32>
    %c16_i32_14 = arith.constant 16 : i32
    %49 = vector.broadcast %c16_i32_14 : i32 to vector<8x256xi32>
    %50 = arith.shrui %48, %49 : vector<8x256xi32>
    %51 = arith.xori %48, %50 : vector<8x256xi32>
    %c8_i32_15 = arith.constant 8 : i32
    %52 = vector.broadcast %c8_i32_15 : i32 to vector<8x256xi32>
    %53 = arith.shrui %51, %52 : vector<8x256xi32>
    %54 = arith.cmpi slt, %53, %3 : vector<8x256xi32>
    %55 = arith.extui %54 : vector<8x256xi1> to vector<8x256xi32>
    %56 = arith.sitofp %55 : vector<8x256xi32> to vector<8x256xf32>
    %c0_16 = arith.constant 0 : index
    %c0_17 = arith.constant 0 : index
    %c0_18 = arith.constant 0 : index
    %57 = vector.load %arg4[%c0_16, %c0_17, %c0_18] : memref<8x8x256xf32, #tpu.memory_space<vmem>>, vector<1x8x256xf32>
    %58 = vector.shape_cast %57 : vector<1x8x256xf32> to vector<8x256xf32>
    %59 = vector.shape_cast %56 : vector<8x256xf32> to vector<1x8x256xf32>
    tpu.vector_store %arg4[%c0_16, %c0_17, %c0_18], %59 {strides = array<i32>} : memref<8x8x256xf32, #tpu.memory_space<vmem>>, vector<1x8x256xf32>,
    %c8_i32_19 = arith.constant 8 : i32
    %60 = arith.muli %arg1, %c8_i32_19 : i32
    %c1_i32 = arith.constant 1 : i32
    %61 = arith.addi %60, %c1_i32 : i32
    %c-1640531527_i32_20 = arith.constant -1640531527 : i32
    %62 = arith.muli %61, %c-1640531527_i32_20 : i32
    %63 = arith.addi %62, %24 : i32
    %c16_i32_21 = arith.constant 16 : i32
    %64 = arith.shrui %63, %c16_i32_21 : i32
    %65 = arith.xori %63, %64 : i32
    %c2146121005_i32_22 = arith.constant 2146121005 : i32
    %66 = arith.muli %65, %c2146121005_i32_22 : i32
    %c15_i32_23 = arith.constant 15 : i32
    %67 = arith.shrui %66, %c15_i32_23 : i32
    %68 = arith.xori %66, %67 : i32
    %c-2073254261_i32_24 = arith.constant -2073254261 : i32
    %69 = arith.muli %68, %c-2073254261_i32_24 : i32
    %c16_i32_25 = arith.constant 16 : i32
    %70 = arith.shrui %69, %c16_i32_25 : i32
    %71 = arith.xori %69, %70 : i32
    %72 = vector.broadcast %71 : i32 to vector<8x256xi32>
    %73 = arith.addi %13, %72 : vector<8x256xi32>
    %c16_i32_26 = arith.constant 16 : i32
    %74 = vector.broadcast %c16_i32_26 : i32 to vector<8x256xi32>
    %75 = arith.shrui %73, %74 : vector<8x256xi32>
    %76 = arith.xori %73, %75 : vector<8x256xi32>
    %c2146121005_i32_27 = arith.constant 2146121005 : i32
    %77 = vector.broadcast %c2146121005_i32_27 : i32 to vector<8x256xi32>
    %78 = arith.muli %76, %77 : vector<8x256xi32>
    %c15_i32_28 = arith.constant 15 : i32
    %79 = vector.broadcast %c15_i32_28 : i32 to vector<8x256xi32>
    %80 = arith.shrui %78, %79 : vector<8x256xi32>
    %81 = arith.xori %78, %80 : vector<8x256xi32>
    %c-2073254261_i32_29 = arith.constant -2073254261 : i32
    %82 = vector.broadcast %c-2073254261_i32_29 : i32 to vector<8x256xi32>
    %83 = arith.muli %81, %82 : vector<8x256xi32>
    %c16_i32_30 = arith.constant 16 : i32
    %84 = vector.broadcast %c16_i32_30 : i32 to vector<8x256xi32>
    %85 = arith.shrui %83, %84 : vector<8x256xi32>
    %86 = arith.xori %83, %85 : vector<8x256xi32>
    %c8_i32_31 = arith.constant 8 : i32
    %87 = vector.broadcast %c8_i32_31 : i32 to vector<8x256xi32>
    %88 = arith.shrui %86, %87 : vector<8x256xi32>
    %89 = arith.cmpi slt, %88, %3 : vector<8x256xi32>
    %90 = arith.extui %89 : vector<8x256xi1> to vector<8x256xi32>
    %91 = arith.sitofp %90 : vector<8x256xi32> to vector<8x256xf32>
    %c1 = arith.constant 1 : index
    %c0_32 = arith.constant 0 : index
    %c0_33 = arith.constant 0 : index
    %92 = vector.load %arg4[%c1, %c0_32, %c0_33] : memref<8x8x256xf32, #tpu.memory_space<vmem>>, vector<1x8x256xf32>
    %93 = vector.shape_cast %92 : vector<1x8x256xf32> to vector<8x256xf32>
    %94 = vector.shape_cast %91 : vector<8x256xf32> to vector<1x8x256xf32>
    tpu.vector_store %arg4[%c1, %c0_32, %c0_33], %94 {strides = array<i32>} : memref<8x8x256xf32, #tpu.memory_space<vmem>>, vector<1x8x256xf32>,
    %c8_i32_34 = arith.constant 8 : i32
    %95 = arith.muli %arg1, %c8_i32_34 : i32
    %c2_i32 = arith.constant 2 : i32
    %96 = arith.addi %95, %c2_i32 : i32
    %c-1640531527_i32_35 = arith.constant -1640531527 : i32
    %97 = arith.muli %96, %c-1640531527_i32_35 : i32
    %98 = arith.addi %97, %24 : i32
    %c16_i32_36 = arith.constant 16 : i32
    %99 = arith.shrui %98, %c16_i32_36 : i32
    %100 = arith.xori %98, %99 : i32
    %c2146121005_i32_37 = arith.constant 2146121005 : i32
    %101 = arith.muli %100, %c2146121005_i32_37 : i32
    %c15_i32_38 = arith.constant 15 : i32
    %102 = arith.shrui %101, %c15_i32_38 : i32
    %103 = arith.xori %101, %102 : i32
    %c-2073254261_i32_39 = arith.constant -2073254261 : i32
    %104 = arith.muli %103, %c-2073254261_i32_39 : i32
    %c16_i32_40 = arith.constant 16 : i32
    %105 = arith.shrui %104, %c16_i32_40 : i32
    %106 = arith.xori %104, %105 : i32
    %107 = vector.broadcast %106 : i32 to vector<8x256xi32>
    %108 = arith.addi %13, %107 : vector<8x256xi32>
    %c16_i32_41 = arith.constant 16 : i32
    %109 = vector.broadcast %c16_i32_41 : i32 to vector<8x256xi32>
    %110 = arith.shrui %108, %109 : vector<8x256xi32>
    %111 = arith.xori %108, %110 : vector<8x256xi32>
    %c2146121005_i32_42 = arith.constant 2146121005 : i32
    %112 = vector.broadcast %c2146121005_i32_42 : i32 to vector<8x256xi32>
    %113 = arith.muli %111, %112 : vector<8x256xi32>
    %c15_i32_43 = arith.constant 15 : i32
    %114 = vector.broadcast %c15_i32_43 : i32 to vector<8x256xi32>
    %115 = arith.shrui %113, %114 : vector<8x256xi32>
    %116 = arith.xori %113, %115 : vector<8x256xi32>
    %c-2073254261_i32_44 = arith.constant -2073254261 : i32
    %117 = vector.broadcast %c-2073254261_i32_44 : i32 to vector<8x256xi32>
    %118 = arith.muli %116, %117 : vector<8x256xi32>
    %c16_i32_45 = arith.constant 16 : i32
    %119 = vector.broadcast %c16_i32_45 : i32 to vector<8x256xi32>
    %120 = arith.shrui %118, %119 : vector<8x256xi32>
    %121 = arith.xori %118, %120 : vector<8x256xi32>
    %c8_i32_46 = arith.constant 8 : i32
    %122 = vector.broadcast %c8_i32_46 : i32 to vector<8x256xi32>
    %123 = arith.shrui %121, %122 : vector<8x256xi32>
    %124 = arith.cmpi slt, %123, %3 : vector<8x256xi32>
    %125 = arith.extui %124 : vector<8x256xi1> to vector<8x256xi32>
    %126 = arith.sitofp %125 : vector<8x256xi32> to vector<8x256xf32>
    %c2 = arith.constant 2 : index
    %c0_47 = arith.constant 0 : index
    %c0_48 = arith.constant 0 : index
    %127 = vector.load %arg4[%c2, %c0_47, %c0_48] : memref<8x8x256xf32, #tpu.memory_space<vmem>>, vector<1x8x256xf32>
    %128 = vector.shape_cast %127 : vector<1x8x256xf32> to vector<8x256xf32>
    %129 = vector.shape_cast %126 : vector<8x256xf32> to vector<1x8x256xf32>
    tpu.vector_store %arg4[%c2, %c0_47, %c0_48], %129 {strides = array<i32>} : memref<8x8x256xf32, #tpu.memory_space<vmem>>, vector<1x8x256xf32>,
    %c8_i32_49 = arith.constant 8 : i32
    %130 = arith.muli %arg1, %c8_i32_49 : i32
    %c3_i32 = arith.constant 3 : i32
    %131 = arith.addi %130, %c3_i32 : i32
    %c-1640531527_i32_50 = arith.constant -1640531527 : i32
    %132 = arith.muli %131, %c-1640531527_i32_50 : i32
    %133 = arith.addi %132, %24 : i32
    %c16_i32_51 = arith.constant 16 : i32
    %134 = arith.shrui %133, %c16_i32_51 : i32
    %135 = arith.xori %133, %134 : i32
    %c2146121005_i32_52 = arith.constant 2146121005 : i32
    %136 = arith.muli %135, %c2146121005_i32_52 : i32
    %c15_i32_53 = arith.constant 15 : i32
    %137 = arith.shrui %136, %c15_i32_53 : i32
    %138 = arith.xori %136, %137 : i32
    %c-2073254261_i32_54 = arith.constant -2073254261 : i32
    %139 = arith.muli %138, %c-2073254261_i32_54 : i32
    %c16_i32_55 = arith.constant 16 : i32
    %140 = arith.shrui %139, %c16_i32_55 : i32
    %141 = arith.xori %139, %140 : i32
    %142 = vector.broadcast %141 : i32 to vector<8x256xi32>
    %143 = arith.addi %13, %142 : vector<8x256xi32>
    %c16_i32_56 = arith.constant 16 : i32
    %144 = vector.broadcast %c16_i32_56 : i32 to vector<8x256xi32>
    %145 = arith.shrui %143, %144 : vector<8x256xi32>
    %146 = arith.xori %143, %145 : vector<8x256xi32>
    %c2146121005_i32_57 = arith.constant 2146121005 : i32
    %147 = vector.broadcast %c2146121005_i32_57 : i32 to vector<8x256xi32>
    %148 = arith.muli %146, %147 : vector<8x256xi32>
    %c15_i32_58 = arith.constant 15 : i32
    %149 = vector.broadcast %c15_i32_58 : i32 to vector<8x256xi32>
    %150 = arith.shrui %148, %149 : vector<8x256xi32>
    %151 = arith.xori %148, %150 : vector<8x256xi32>
    %c-2073254261_i32_59 = arith.constant -2073254261 : i32
    %152 = vector.broadcast %c-2073254261_i32_59 : i32 to vector<8x256xi32>
    %153 = arith.muli %151, %152 : vector<8x256xi32>
    %c16_i32_60 = arith.constant 16 : i32
    %154 = vector.broadcast %c16_i32_60 : i32 to vector<8x256xi32>
    %155 = arith.shrui %153, %154 : vector<8x256xi32>
    %156 = arith.xori %153, %155 : vector<8x256xi32>
    %c8_i32_61 = arith.constant 8 : i32
    %157 = vector.broadcast %c8_i32_61 : i32 to vector<8x256xi32>
    %158 = arith.shrui %156, %157 : vector<8x256xi32>
    %159 = arith.cmpi slt, %158, %3 : vector<8x256xi32>
    %160 = arith.extui %159 : vector<8x256xi1> to vector<8x256xi32>
    %161 = arith.sitofp %160 : vector<8x256xi32> to vector<8x256xf32>
    %c3 = arith.constant 3 : index
    %c0_62 = arith.constant 0 : index
    %c0_63 = arith.constant 0 : index
    %162 = vector.load %arg4[%c3, %c0_62, %c0_63] : memref<8x8x256xf32, #tpu.memory_space<vmem>>, vector<1x8x256xf32>
    %163 = vector.shape_cast %162 : vector<1x8x256xf32> to vector<8x256xf32>
    %164 = vector.shape_cast %161 : vector<8x256xf32> to vector<1x8x256xf32>
    tpu.vector_store %arg4[%c3, %c0_62, %c0_63], %164 {strides = array<i32>} : memref<8x8x256xf32, #tpu.memory_space<vmem>>, vector<1x8x256xf32>,
    %c8_i32_64 = arith.constant 8 : i32
    %165 = arith.muli %arg1, %c8_i32_64 : i32
    %c4_i32 = arith.constant 4 : i32
    %166 = arith.addi %165, %c4_i32 : i32
    %c-1640531527_i32_65 = arith.constant -1640531527 : i32
    %167 = arith.muli %166, %c-1640531527_i32_65 : i32
    %168 = arith.addi %167, %24 : i32
    %c16_i32_66 = arith.constant 16 : i32
    %169 = arith.shrui %168, %c16_i32_66 : i32
    %170 = arith.xori %168, %169 : i32
    %c2146121005_i32_67 = arith.constant 2146121005 : i32
    %171 = arith.muli %170, %c2146121005_i32_67 : i32
    %c15_i32_68 = arith.constant 15 : i32
    %172 = arith.shrui %171, %c15_i32_68 : i32
    %173 = arith.xori %171, %172 : i32
    %c-2073254261_i32_69 = arith.constant -2073254261 : i32
    %174 = arith.muli %173, %c-2073254261_i32_69 : i32
    %c16_i32_70 = arith.constant 16 : i32
    %175 = arith.shrui %174, %c16_i32_70 : i32
    %176 = arith.xori %174, %175 : i32
    %177 = vector.broadcast %176 : i32 to vector<8x256xi32>
    %178 = arith.addi %13, %177 : vector<8x256xi32>
    %c16_i32_71 = arith.constant 16 : i32
    %179 = vector.broadcast %c16_i32_71 : i32 to vector<8x256xi32>
    %180 = arith.shrui %178, %179 : vector<8x256xi32>
    %181 = arith.xori %178, %180 : vector<8x256xi32>
    %c2146121005_i32_72 = arith.constant 2146121005 : i32
    %182 = vector.broadcast %c2146121005_i32_72 : i32 to vector<8x256xi32>
    %183 = arith.muli %181, %182 : vector<8x256xi32>
    %c15_i32_73 = arith.constant 15 : i32
    %184 = vector.broadcast %c15_i32_73 : i32 to vector<8x256xi32>
    %185 = arith.shrui %183, %184 : vector<8x256xi32>
    %186 = arith.xori %183, %185 : vector<8x256xi32>
    %c-2073254261_i32_74 = arith.constant -2073254261 : i32
    %187 = vector.broadcast %c-2073254261_i32_74 : i32 to vector<8x256xi32>
    %188 = arith.muli %186, %187 : vector<8x256xi32>
    %c16_i32_75 = arith.constant 16 : i32
    %189 = vector.broadcast %c16_i32_75 : i32 to vector<8x256xi32>
    %190 = arith.shrui %188, %189 : vector<8x256xi32>
    %191 = arith.xori %188, %190 : vector<8x256xi32>
    %c8_i32_76 = arith.constant 8 : i32
    %192 = vector.broadcast %c8_i32_76 : i32 to vector<8x256xi32>
    %193 = arith.shrui %191, %192 : vector<8x256xi32>
    %194 = arith.cmpi slt, %193, %3 : vector<8x256xi32>
    %195 = arith.extui %194 : vector<8x256xi1> to vector<8x256xi32>
    %196 = arith.sitofp %195 : vector<8x256xi32> to vector<8x256xf32>
    %c4 = arith.constant 4 : index
    %c0_77 = arith.constant 0 : index
    %c0_78 = arith.constant 0 : index
    %197 = vector.load %arg4[%c4, %c0_77, %c0_78] : memref<8x8x256xf32, #tpu.memory_space<vmem>>, vector<1x8x256xf32>
    %198 = vector.shape_cast %197 : vector<1x8x256xf32> to vector<8x256xf32>
    %199 = vector.shape_cast %196 : vector<8x256xf32> to vector<1x8x256xf32>
    tpu.vector_store %arg4[%c4, %c0_77, %c0_78], %199 {strides = array<i32>} : memref<8x8x256xf32, #tpu.memory_space<vmem>>, vector<1x8x256xf32>,
    %c8_i32_79 = arith.constant 8 : i32
    %200 = arith.muli %arg1, %c8_i32_79 : i32
    %c5_i32 = arith.constant 5 : i32
    %201 = arith.addi %200, %c5_i32 : i32
    %c-1640531527_i32_80 = arith.constant -1640531527 : i32
    %202 = arith.muli %201, %c-1640531527_i32_80 : i32
    %203 = arith.addi %202, %24 : i32
    %c16_i32_81 = arith.constant 16 : i32
    %204 = arith.shrui %203, %c16_i32_81 : i32
    %205 = arith.xori %203, %204 : i32
    %c2146121005_i32_82 = arith.constant 2146121005 : i32
    %206 = arith.muli %205, %c2146121005_i32_82 : i32
    %c15_i32_83 = arith.constant 15 : i32
    %207 = arith.shrui %206, %c15_i32_83 : i32
    %208 = arith.xori %206, %207 : i32
    %c-2073254261_i32_84 = arith.constant -2073254261 : i32
    %209 = arith.muli %208, %c-2073254261_i32_84 : i32
    %c16_i32_85 = arith.constant 16 : i32
    %210 = arith.shrui %209, %c16_i32_85 : i32
    %211 = arith.xori %209, %210 : i32
    %212 = vector.broadcast %211 : i32 to vector<8x256xi32>
    %213 = arith.addi %13, %212 : vector<8x256xi32>
    %c16_i32_86 = arith.constant 16 : i32
    %214 = vector.broadcast %c16_i32_86 : i32 to vector<8x256xi32>
    %215 = arith.shrui %213, %214 : vector<8x256xi32>
    %216 = arith.xori %213, %215 : vector<8x256xi32>
    %c2146121005_i32_87 = arith.constant 2146121005 : i32
    %217 = vector.broadcast %c2146121005_i32_87 : i32 to vector<8x256xi32>
    %218 = arith.muli %216, %217 : vector<8x256xi32>
    %c15_i32_88 = arith.constant 15 : i32
    %219 = vector.broadcast %c15_i32_88 : i32 to vector<8x256xi32>
    %220 = arith.shrui %218, %219 : vector<8x256xi32>
    %221 = arith.xori %218, %220 : vector<8x256xi32>
    %c-2073254261_i32_89 = arith.constant -2073254261 : i32
    %222 = vector.broadcast %c-2073254261_i32_89 : i32 to vector<8x256xi32>
    %223 = arith.muli %221, %222 : vector<8x256xi32>
    %c16_i32_90 = arith.constant 16 : i32
    %224 = vector.broadcast %c16_i32_90 : i32 to vector<8x256xi32>
    %225 = arith.shrui %223, %224 : vector<8x256xi32>
    %226 = arith.xori %223, %225 : vector<8x256xi32>
    %c8_i32_91 = arith.constant 8 : i32
    %227 = vector.broadcast %c8_i32_91 : i32 to vector<8x256xi32>
    %228 = arith.shrui %226, %227 : vector<8x256xi32>
    %229 = arith.cmpi slt, %228, %3 : vector<8x256xi32>
    %230 = arith.extui %229 : vector<8x256xi1> to vector<8x256xi32>
    %231 = arith.sitofp %230 : vector<8x256xi32> to vector<8x256xf32>
    %c5 = arith.constant 5 : index
    %c0_92 = arith.constant 0 : index
    %c0_93 = arith.constant 0 : index
    %232 = vector.load %arg4[%c5, %c0_92, %c0_93] : memref<8x8x256xf32, #tpu.memory_space<vmem>>, vector<1x8x256xf32>
    %233 = vector.shape_cast %232 : vector<1x8x256xf32> to vector<8x256xf32>
    %234 = vector.shape_cast %231 : vector<8x256xf32> to vector<1x8x256xf32>
    tpu.vector_store %arg4[%c5, %c0_92, %c0_93], %234 {strides = array<i32>} : memref<8x8x256xf32, #tpu.memory_space<vmem>>, vector<1x8x256xf32>,
    %c8_i32_94 = arith.constant 8 : i32
    %235 = arith.muli %arg1, %c8_i32_94 : i32
    %c6_i32 = arith.constant 6 : i32
    %236 = arith.addi %235, %c6_i32 : i32
    %c-1640531527_i32_95 = arith.constant -1640531527 : i32
    %237 = arith.muli %236, %c-1640531527_i32_95 : i32
    %238 = arith.addi %237, %24 : i32
    %c16_i32_96 = arith.constant 16 : i32
    %239 = arith.shrui %238, %c16_i32_96 : i32
    %240 = arith.xori %238, %239 : i32
    %c2146121005_i32_97 = arith.constant 2146121005 : i32
    %241 = arith.muli %240, %c2146121005_i32_97 : i32
    %c15_i32_98 = arith.constant 15 : i32
    %242 = arith.shrui %241, %c15_i32_98 : i32
    %243 = arith.xori %241, %242 : i32
    %c-2073254261_i32_99 = arith.constant -2073254261 : i32
    %244 = arith.muli %243, %c-2073254261_i32_99 : i32
    %c16_i32_100 = arith.constant 16 : i32
    %245 = arith.shrui %244, %c16_i32_100 : i32
    %246 = arith.xori %244, %245 : i32
    %247 = vector.broadcast %246 : i32 to vector<8x256xi32>
    %248 = arith.addi %13, %247 : vector<8x256xi32>
    %c16_i32_101 = arith.constant 16 : i32
    %249 = vector.broadcast %c16_i32_101 : i32 to vector<8x256xi32>
    %250 = arith.shrui %248, %249 : vector<8x256xi32>
    %251 = arith.xori %248, %250 : vector<8x256xi32>
    %c2146121005_i32_102 = arith.constant 2146121005 : i32
    %252 = vector.broadcast %c2146121005_i32_102 : i32 to vector<8x256xi32>
    %253 = arith.muli %251, %252 : vector<8x256xi32>
    %c15_i32_103 = arith.constant 15 : i32
    %254 = vector.broadcast %c15_i32_103 : i32 to vector<8x256xi32>
    %255 = arith.shrui %253, %254 : vector<8x256xi32>
    %256 = arith.xori %253, %255 : vector<8x256xi32>
    %c-2073254261_i32_104 = arith.constant -2073254261 : i32
    %257 = vector.broadcast %c-2073254261_i32_104 : i32 to vector<8x256xi32>
    %258 = arith.muli %256, %257 : vector<8x256xi32>
    %c16_i32_105 = arith.constant 16 : i32
    %259 = vector.broadcast %c16_i32_105 : i32 to vector<8x256xi32>
    %260 = arith.shrui %258, %259 : vector<8x256xi32>
    %261 = arith.xori %258, %260 : vector<8x256xi32>
    %c8_i32_106 = arith.constant 8 : i32
    %262 = vector.broadcast %c8_i32_106 : i32 to vector<8x256xi32>
    %263 = arith.shrui %261, %262 : vector<8x256xi32>
    %264 = arith.cmpi slt, %263, %3 : vector<8x256xi32>
    %265 = arith.extui %264 : vector<8x256xi1> to vector<8x256xi32>
    %266 = arith.sitofp %265 : vector<8x256xi32> to vector<8x256xf32>
    %c6 = arith.constant 6 : index
    %c0_107 = arith.constant 0 : index
    %c0_108 = arith.constant 0 : index
    %267 = vector.load %arg4[%c6, %c0_107, %c0_108] : memref<8x8x256xf32, #tpu.memory_space<vmem>>, vector<1x8x256xf32>
    %268 = vector.shape_cast %267 : vector<1x8x256xf32> to vector<8x256xf32>
    %269 = vector.shape_cast %266 : vector<8x256xf32> to vector<1x8x256xf32>
    tpu.vector_store %arg4[%c6, %c0_107, %c0_108], %269 {strides = array<i32>} : memref<8x8x256xf32, #tpu.memory_space<vmem>>, vector<1x8x256xf32>,
    %c8_i32_109 = arith.constant 8 : i32
    %270 = arith.muli %arg1, %c8_i32_109 : i32
    %c7_i32 = arith.constant 7 : i32
    %271 = arith.addi %270, %c7_i32 : i32
    %c-1640531527_i32_110 = arith.constant -1640531527 : i32
    %272 = arith.muli %271, %c-1640531527_i32_110 : i32
    %273 = arith.addi %272, %24 : i32
    %c16_i32_111 = arith.constant 16 : i32
    %274 = arith.shrui %273, %c16_i32_111 : i32
    %275 = arith.xori %273, %274 : i32
    %c2146121005_i32_112 = arith.constant 2146121005 : i32
    %276 = arith.muli %275, %c2146121005_i32_112 : i32
    %c15_i32_113 = arith.constant 15 : i32
    %277 = arith.shrui %276, %c15_i32_113 : i32
    %278 = arith.xori %276, %277 : i32
    %c-2073254261_i32_114 = arith.constant -2073254261 : i32
    %279 = arith.muli %278, %c-2073254261_i32_114 : i32
    %c16_i32_115 = arith.constant 16 : i32
    %280 = arith.shrui %279, %c16_i32_115 : i32
    %281 = arith.xori %279, %280 : i32
    %282 = vector.broadcast %281 : i32 to vector<8x256xi32>
    %283 = arith.addi %13, %282 : vector<8x256xi32>
    %c16_i32_116 = arith.constant 16 : i32
    %284 = vector.broadcast %c16_i32_116 : i32 to vector<8x256xi32>
    %285 = arith.shrui %283, %284 : vector<8x256xi32>
    %286 = arith.xori %283, %285 : vector<8x256xi32>
    %c2146121005_i32_117 = arith.constant 2146121005 : i32
    %287 = vector.broadcast %c2146121005_i32_117 : i32 to vector<8x256xi32>
    %288 = arith.muli %286, %287 : vector<8x256xi32>
    %c15_i32_118 = arith.constant 15 : i32
    %289 = vector.broadcast %c15_i32_118 : i32 to vector<8x256xi32>
    %290 = arith.shrui %288, %289 : vector<8x256xi32>
    %291 = arith.xori %288, %290 : vector<8x256xi32>
    %c-2073254261_i32_119 = arith.constant -2073254261 : i32
    %292 = vector.broadcast %c-2073254261_i32_119 : i32 to vector<8x256xi32>
    %293 = arith.muli %291, %292 : vector<8x256xi32>
    %c16_i32_120 = arith.constant 16 : i32
    %294 = vector.broadcast %c16_i32_120 : i32 to vector<8x256xi32>
    %295 = arith.shrui %293, %294 : vector<8x256xi32>
    %296 = arith.xori %293, %295 : vector<8x256xi32>
    %c8_i32_121 = arith.constant 8 : i32
    %297 = vector.broadcast %c8_i32_121 : i32 to vector<8x256xi32>
    %298 = arith.shrui %296, %297 : vector<8x256xi32>
    %299 = arith.cmpi slt, %298, %3 : vector<8x256xi32>
    %300 = arith.extui %299 : vector<8x256xi1> to vector<8x256xi32>
    %301 = arith.sitofp %300 : vector<8x256xi32> to vector<8x256xf32>
    %c7 = arith.constant 7 : index
    %c0_122 = arith.constant 0 : index
    %c0_123 = arith.constant 0 : index
    %302 = vector.load %arg4[%c7, %c0_122, %c0_123] : memref<8x8x256xf32, #tpu.memory_space<vmem>>, vector<1x8x256xf32>
    %303 = vector.shape_cast %302 : vector<1x8x256xf32> to vector<8x256xf32>
    %304 = vector.shape_cast %301 : vector<8x256xf32> to vector<1x8x256xf32>
    tpu.vector_store %arg4[%c7, %c0_122, %c0_123], %304 {strides = array<i32>} : memref<8x8x256xf32, #tpu.memory_space<vmem>>, vector<1x8x256xf32>,
    return
  }
  func.func @transform_0(%arg0: i32, %arg1: i32, %arg2: memref<1xi32, #tpu.memory_space<smem>>) -> (i32, i32) {
    %c0_i32 = arith.constant 0 : i32
    %c0_i32_0 = arith.constant 0 : i32
    return %arg0, %c0_i32 : i32, i32
  }
  func.func @transform_1(%arg0: i32, %arg1: i32, %arg2: memref<1xi32, #tpu.memory_space<smem>>) -> (i32, i32, i32) {
    %c0_i32 = arith.constant 0 : i32
    %c0_i32_0 = arith.constant 0 : i32
    return %arg1, %arg0, %c0_i32 : i32, i32, i32
  }
}

</mosaic_0001>

<bundles_post_ra>
// kernel: tpu_custom_call.1
= control target key start
LH: loop header
LB: loop body
LE: loop exit
PB: predicated region body
PF: predicated region fallthrough
CT: control target
= control target key end

     0   :  { %8 = vsyncpa [#allocation5], 0  ;;  %s614_s0 = inlined_call_operand.<no memory space> [shape: s32[1], index: 0, kind: input, shape index: {}]   ;;  %s615_s1 = inlined_call_operand.hbm [shape: f32[8,256], index: 1, kind: input, shape index: {}]   ;;  %s616_s2 = inlined_call_operand.hbm [shape: f32[8,8,256], index: 2, kind: output, shape index: {}]  }
   0x1   :  { %9 = vsyncpa [#allocation6], 0  ;;  %s470_s9 = smov [#allocation4]   ;;  %s422_s13 = scalar_lea.hbm %s615_s1, 256 }
   0x2   :  { %s16_s10 = sshll.u32 %s470_s9, 4  ;;  %p423_p0 = scmp.ne.s32.totalorder %s615_s1, %s422_s13  ;;  %s17_s10 = int_to_ptr.vmem [resolvable:$true] %s16_s10 }
   0x3   :  { %p426_p1 = scmp.lt.u32.totalorder %s422_s13, %s615_s1 }
   0x5   :  { %p428_p2 = pnand %p426_p1, %p423_p0 }
   0x7   :  { %431 = shalt.err (!%p428_p2)
}
   0x8   :  { %s432_s18 = scalar_lea.vmem %s17_s10, 256  ;;  %p437_p4 = scmp.lt.s32.totalorder %s17_s10, %s17_s10 }
   0x9   :  { %p433_p3 = scmp.ne.s32.totalorder %s17_s10, %s432_s18  ;;  %p438_p5 = scmp.lt.s32.totalorder %s432_s18, %s432_s18 }
   0xb   :  { %p439_p6 = por %p438_p5, %p437_p4 }
   0xd   :  { %p440_p7 = pnand %p439_p6, %p433_p3 }
   0xf   :  { %443 = shalt.err (!%p440_p7)
}
  0x10   :  { %19 = dma.hbm_to_vmem [thread:$0]  %s615_s1, 256, %s17_s10, [#allocation5]  }
  0x11   :  { %466 = dma.done.wait [#allocation5], 256  }
  0x12   :  { %467 = vsyncadd [#allocation5], 4294967040  ;;  %s43_s23 = smul.u32 2246822507, %s614_s0  ;;  %v29_v0 = vlaneseq  ;;  %v23_v13 = vld [vmem:[#allocation4] sm:$0xff]  ;;  %v24_v17 = vld [vmem:[#allocation4 + $0x8] sm:$0xff] }
  0x13   :  { %v25_v21 = vmul.f32 16777216.0, %v23_v13  ;;  %v26_v24 = vmul.f32 16777216.0, %v24_v17 }
  0x14   :  { %s44_s24 = sadd.s32 3266489909, %s43_s23  ;;  %v30_v1 = vshrl.u32 %v29_v0, 7  ;;  %v32_v2 = vand.u32 127, %v29_v0 }
  0x15   :  { %s45_s25 = sshrl.u32 %s44_s24, 16  ;;  %v413_v38 = vtrunc.f32 %v25_v21  ;;  %v415_v39 = vtrunc.f32 %v26_v24  ;;  %v471_v21 = vmov 0.0  }
  0x16   :  { %s46_s26 = sxor.u32 %s45_s25, %s44_s24  ;;  %v37_v3 = vmul.u32 256, %v30_v1  ;;  %v33_v4 = vadd.s32 128, %v32_v2 }
  0x17   :  { %s47_s27 = smul.u32 2146121005, %s46_s26  ;;  %v530_v53 = vcvt.f32.s32 %v413_v38  ;;  %v532_v54 = vcvt.f32.s32 %v415_v39 }
  0x18   :  { %v38_v5 = vadd.s32 %v37_v3, %v32_v2  ;;  %v39_v6 = vadd.s32 %v37_v3, %v33_v4 }
  0x19   :  { %s48_s28 = sshrl.u32 %s47_s27, 15 }
  0x1a   :  { %s49_s29 = sxor.u32 %s48_s28, %s47_s27  ;;  %v511_v7 = vmul.u32 2654435769, %v38_v5  ;;  %v513_v8 = vmul.u32 2654435769, %v39_v6 }
  0x1b   :  { %s50_s30 = smul.u32 2221713035, %s49_s29 }
  0x1d   :  { %s51_s3 = sshrl.u32 %s50_s30, 16 }
  0x1e   :  { %s505_s4 = sxor.u32 %s51_s3, %s50_s30 }
  0x1f   :  { %s55_s0 = sshrl.u32 %s505_s4, 16  ;;  %s95_s1 = sadd.s32 2654435769, %s505_s4 }
  0x20   :  { %s56_s5 = sxor.u32 %s55_s0, %s505_s4  ;;  %s96_s6 = sshrl.u32 %s95_s1, 16 }
  0x21   :  { %s57_s7 = smul.u32 2146121005, %s56_s5  ;;  %s97_s8 = sxor.u32 %s96_s6, %s95_s1 }
  0x22   :  { %s98_s9 = smul.u32 2146121005, %s97_s8  ;;  %s136_s10 = sadd.s32 1013904242, %s505_s4 }
  0x23   :  { %s58_s11 = sshrl.u32 %s57_s7, 15  ;;  %s137_s12 = sshrl.u32 %s136_s10, 16 }
  0x24   :  { %s59_s13 = sxor.u32 %s58_s11, %s57_s7  ;;  %s99_s14 = sshrl.u32 %s98_s9, 15 }
  0x25   :  { %s60_s15 = smul.u32 2221713035, %s59_s13  ;;  %s100_s16 = sxor.u32 %s99_s14, %s98_s9 }
  0x26   :  { %s101_s17 = smul.u32 2221713035, %s100_s16  ;;  %s138_s18 = sxor.u32 %s137_s12, %s136_s10 }
  0x27   :  { %s61_s19 = sshrl.u32 %s60_s15, 16  ;;  %s139_s20 = smul.u32 2146121005, %s138_s18 }
  0x28   :  { %s62_s21 = sxor.u32 %s61_s19, %s60_s15  ;;  %s102_s22 = sshrl.u32 %s101_s17, 16 }
  0x29   :  { %v63_v9 = vstv %s62_s21  ;;  %s103_s23 = sxor.u32 %s102_s22, %s101_s17  ;;  %s140_s24 = sshrl.u32 %s139_s20, 15 }
  0x2a   :  { %v64_v10 = vadd.s32 %v63_v9, %v511_v7  ;;  %v65_v11 = vadd.s32 %v63_v9, %v513_v8  ;;  %v104_v12 = vstv %s103_s23  ;;  %s141_s25 = sxor.u32 %s140_s24, %s139_s20  ;;  %s177_s26 = sadd.s32 3668340011, %s505_s4 }
  0x2b   :  { %v105_v14 = vadd.s32 %v104_v12, %v511_v7  ;;  %v106_v15 = vadd.s32 %v104_v12, %v513_v8  ;;  %s142_s27 = smul.u32 2221713035, %s141_s25  ;;  %s178_s28 = sshrl.u32 %s177_s26, 16 }
  0x2c   :  { %v66_v16 = vshrl.u32 %v64_v10, 16  ;;  %v67_v18 = vshrl.u32 %v65_v11, 16  ;;  %s179_s29 = sxor.u32 %s178_s28, %s177_s26  ;;  %s218_s30 = sadd.s32 2027808484, %s505_s4 }
  0x2d   :  { %v107_v19 = vshrl.u32 %v105_v14, 16  ;;  %v108_v20 = vshrl.u32 %v106_v15, 16  ;;  %s143_s3 = sshrl.u32 %s142_s27, 16  ;;  %s180_s0 = smul.u32 2146121005, %s179_s29 }
  0x2e   :  { %v68_v22 = vxor.u32 %v66_v16, %v64_v10  ;;  %v69_v23 = vxor.u32 %v67_v18, %v65_v11  ;;  %s144_s1 = sxor.u32 %s143_s3, %s142_s27  ;;  %s219_s5 = sshrl.u32 %s218_s30, 16 }
  0x2f   :  { %v109_v25 = vxor.u32 %v107_v19, %v105_v14  ;;  %v110_v26 = vxor.u32 %v108_v20, %v106_v15  ;;  %v145_v27 = vstv %s144_s1  ;;  %s181_s6 = sshrl.u32 %s180_s0, 15  ;;  %s220_s7 = sxor.u32 %s219_s5, %s218_s30 }
  0x30   :  { %v70_v28 = vmul.u32 2146121005, %v68_v22  ;;  %v71_v29 = vmul.u32 2146121005, %v69_v23  ;;  %v146_v30 = vadd.s32 %v145_v27, %v511_v7  ;;  %v147_v31 = vadd.s32 %v145_v27, %v513_v8  ;;  %s182_s8 = sxor.u32 %s181_s6, %s180_s0  ;;  %s221_s9 = smul.u32 2146121005, %s220_s7 }
  0x31   :  { %v111_v32 = vmul.u32 2146121005, %v109_v25  ;;  %v112_v33 = vmul.u32 2146121005, %v110_v26  ;;  %s183_s10 = smul.u32 2221713035, %s182_s8 }
  0x32   :  { %v72_v34 = vshrl.u32 %v70_v28, 15  ;;  %v73_v35 = vshrl.u32 %v71_v29, 15  ;;  %v148_v36 = vshrl.u32 %v146_v30, 16  ;;  %v149_v37 = vshrl.u32 %v147_v31, 16  ;;  %s222_s11 = sshrl.u32 %s221_s9, 15 }
  0x33   :  { %v113_v40 = vshrl.u32 %v111_v32, 15  ;;  %v114_v41 = vshrl.u32 %v112_v33, 15  ;;  %s184_s12 = sshrl.u32 %s183_s10, 16  ;;  %s523_s13 = sxor.u32 %s222_s11, %s221_s9 }
  0x34   :  { %v74_v42 = vxor.u32 %v72_v34, %v70_v28  ;;  %v75_v43 = vxor.u32 %v73_v35, %v71_v29  ;;  %v150_v44 = vxor.u32 %v148_v36, %v146_v30  ;;  %v151_v45 = vxor.u32 %v149_v37, %v147_v31  ;;  %s185_s14 = sxor.u32 %s184_s12, %s183_s10  ;;  %s224_s15 = smul.u32 2221713035, %s523_s13 }
  0x35   :  { %v115_v46 = vxor.u32 %v113_v40, %v111_v32  ;;  %v116_v47 = vxor.u32 %v114_v41, %v112_v33  ;;  %v186_v48 = vstv %s185_s14  ;;  %s259_s16 = sadd.s32 387276957, %s505_s4  ;;  %s300_s17 = sadd.s32 3041712726, %s505_s4 }
  0x36   :  { %v76_v49 = vmul.u32 2221713035, %v74_v42  ;;  %v77_v50 = vmul.u32 2221713035, %v75_v43  ;;  %v187_v51 = vadd.s32 %v186_v48, %v511_v7  ;;  %v188_v52 = vadd.s32 %v186_v48, %v513_v8  ;;  %s260_s18 = sshrl.u32 %s259_s16, 16  ;;  %s536_s19 = sshrl.u32 %s224_s15, 16 }
  0x37   :  { %v117_v55 = vmul.u32 2221713035, %v115_v46  ;;  %v118_v56 = vmul.u32 2221713035, %v116_v47  ;;  %s261_s20 = sxor.u32 %s260_s18, %s259_s16  ;;  %s301_s22 = sshrl.u32 %s300_s17, 16 }
  0x38   :  { %v78_v57 = vshrl.u32 %v76_v49, 16  ;;  %v79_v58 = vshrl.u32 %v77_v50, 16  ;;  %v152_v59 = vmul.u32 2146121005, %v150_v44  ;;  %v153_v60 = vmul.u32 2146121005, %v151_v45  ;;  %s543_s25 = sxor.u32 %s301_s22, %s300_s17  ;;  %s226_s28 = sxor.u32 %s536_s19, %s224_s15 }
  0x39   :  { %v119_v61 = vshrl.u32 %v117_v55, 16  ;;  %v120_v62 = vshrl.u32 %v118_v56, 16  ;;  %v189_v63 = vshrl.u32 %v187_v51, 16  ;;  %v190_v0 = vshrl.u32 %v188_v52, 16  ;;  %s262_s21 = smul.u32 2146121005, %s261_s20 }
  0x3a   :  { %v80_v1 = vxor.u32 %v78_v57, %v76_v49  ;;  %v81_v2 = vxor.u32 %v79_v58, %v77_v50  ;;  %v154_v3 = vshrl.u32 %v152_v59, 15  ;;  %v155_v4 = vshrl.u32 %v153_v60, 15  ;;  %s341_s23 = sadd.s32 1401181199, %s505_s4  ;;  %s303_s27 = smul.u32 2146121005, %s543_s25 }
  0x3b   :  { %v121_v5 = vxor.u32 %v119_v61, %v117_v55  ;;  %v122_v6 = vxor.u32 %v120_v62, %v118_v56  ;;  %v191_v9 = vxor.u32 %v189_v63, %v187_v51  ;;  %v192_v10 = vxor.u32 %v190_v0, %v188_v52  ;;  %s263_s24 = sshrl.u32 %s262_s21, 15  ;;  %s342_s3 = sshrl.u32 %s341_s23, 16 }
  0x3c   :  { %v82_v11 = vshrl.u32 %v80_v1, 8  ;;  %v83_v12 = vshrl.u32 %v81_v2, 8  ;;  %v156_v13 = vxor.u32 %v154_v3, %v152_v59  ;;  %v157_v14 = vxor.u32 %v155_v4, %v153_v60  ;;  %s545_s26 = sxor.u32 %s263_s24, %s262_s21  ;;  %s304_s30 = sshrl.u32 %s303_s27, 15 }
  0x3d   :  { %v123_v15 = vshrl.u32 %v121_v5, 8  ;;  %v124_v16 = vshrl.u32 %v122_v6, 8  ;;  %v193_v17 = vmul.u32 2146121005, %v191_v9  ;;  %v194_v18 = vmul.u32 2146121005, %v192_v10  ;;  %s562_s1 = sxor.u32 %s304_s30, %s303_s27  ;;  %s343_s7 = sxor.u32 %s342_s3, %s341_s23 }
  0x3e   :  { %vm84_vm0 = vcmp.lt.s32.totalorder %v82_v11, %v530_v53  ;;  %vm85_vm1 = vcmp.lt.s32.totalorder %v83_v12, %v532_v54  ;;  %v158_v19 = vmul.u32 2221713035, %v156_v13  ;;  %v159_v20 = vmul.u32 2221713035, %v157_v14  ;;  %s265_s29 = smul.u32 2221713035, %s545_s26 }
  0x3f   :  { %v397_v22 = vsel %vm84_vm0, 1.0, %v471_v21  ;;  %v398_v23 = vsel %vm85_vm1, 1.0, %v471_v21  ;;  %vm125_vm2 = vcmp.lt.s32.totalorder %v123_v15, %v530_v53  ;;  %vm126_vm3 = vcmp.lt.s32.totalorder %v124_v16, %v532_v54  ;;  %s306_s6 = smul.u32 2221713035, %s562_s1  ;;  %s472_s15 = smov [#allocation7]  }
  0x40   :  { %90 = vst [vmem:[#allocation7] sm:$0xff] %v397_v22  ;;  %91 = vst [vmem:[#allocation7 + $0x8] sm:$0xff] %v398_v23  ;;  %v399_v24 = vsel %vm125_vm2, 1.0, %v471_v21  ;;  %v400_v25 = vsel %vm126_vm3, 1.0, %v471_v21  ;;  %v160_v26 = vshrl.u32 %v158_v19, 16  ;;  %v161_v27 = vshrl.u32 %v159_v20, 16 }
  0x41   :  { %s266_s0 = sshrl.u32 %s265_s29, 16  ;;  %132 = vst [vmem:[#allocation7 + $0x10] sm:$0xff] %v399_v24  ;;  %133 = vst [vmem:[#allocation7 + $0x18] sm:$0xff] %v400_v25  ;;  %v195_v28 = vshrl.u32 %v193_v17, 15  ;;  %v196_v29 = vshrl.u32 %v194_v18, 15  ;;  %v227_v30 = vstv %s226_s28  ;;  %s307_s8 = sshrl.u32 %s306_s6, 16 }
  0x42   :  { %s267_s5 = sxor.u32 %s266_s0, %s265_s29  ;;  %v162_v31 = vxor.u32 %v160_v26, %v158_v19  ;;  %v163_v32 = vxor.u32 %v161_v27, %v159_v20  ;;  %v228_v33 = vadd.s32 %v227_v30, %v511_v7  ;;  %v229_v34 = vadd.s32 %v227_v30, %v513_v8  ;;  %s344_s9 = smul.u32 2146121005, %s343_s7 }
  0x43   :  { %v197_v35 = vxor.u32 %v195_v28, %v193_v17  ;;  %v198_v36 = vxor.u32 %v196_v29, %v194_v18  ;;  %v268_v37 = vstv %s267_s5  ;;  %s308_s4 = sxor.u32 %s307_s8, %s306_s6  ;;  %s385_s16 = sshll.u32 %s472_s15, 4  ;;  %s386_s16 = int_to_ptr.vmem [resolvable:$true] %s385_s16 }
  0x44   :  { %v164_v38 = vshrl.u32 %v162_v31, 8  ;;  %v165_v39 = vshrl.u32 %v163_v32, 8  ;;  %v230_v40 = vshrl.u32 %v228_v33, 16  ;;  %v231_v41 = vshrl.u32 %v229_v34, 16  ;;  %s345_s10 = sshrl.u32 %s344_s9, 15  ;;  %s444_s17 = scalar_lea.vmem %s386_s16, 2048 }
  0x45   :  { %v199_v42 = vmul.u32 2221713035, %v197_v35  ;;  %v200_v43 = vmul.u32 2221713035, %v198_v36  ;;  %v269_v44 = vadd.s32 %v268_v37, %v511_v7  ;;  %v270_v45 = vadd.s32 %v268_v37, %v513_v8  ;;  %s573_s11 = sxor.u32 %s345_s10, %s344_s9  ;;  %p445_p8 = scmp.ne.s32.totalorder %s386_s16, %s444_s17 }
  0x46   :  { %vm166_vm4 = vcmp.lt.s32.totalorder %v164_v38, %v530_v53  ;;  %vm167_vm5 = vcmp.lt.s32.totalorder %v165_v39, %v532_v54  ;;  %v232_v46 = vxor.u32 %v230_v40, %v228_v33  ;;  %v233_v47 = vxor.u32 %v231_v41, %v229_v34  ;;  %s347_s12 = smul.u32 2221713035, %s573_s11  ;;  %p449_p9 = scmp.lt.s32.totalorder %s386_s16, %s386_s16 }
  0x47   :  { %v401_v48 = vsel %vm166_vm4, 1.0, %v471_v21  ;;  %v402_v49 = vsel %vm167_vm5, 1.0, %v471_v21  ;;  %v201_v50 = vshrl.u32 %v199_v42, 16  ;;  %v202_v51 = vshrl.u32 %v200_v43, 16  ;;  %p450_p10 = scmp.lt.s32.totalorder %s444_s17, %s444_s17 }
  0x48   :  { %173 = vst [vmem:[#allocation7 + $0x20] sm:$0xff] %v401_v48  ;;  %174 = vst [vmem:[#allocation7 + $0x28] sm:$0xff] %v402_v49  ;;  %v234_v52 = vmul.u32 2146121005, %v232_v46  ;;  %v235_v55 = vmul.u32 2146121005, %v233_v47  ;;  %v309_v60 = vstv %s308_s4 }
  0x49   :  { %v271_v56 = vshrl.u32 %v269_v44, 16  ;;  %v272_v57 = vshrl.u32 %v270_v45, 16  ;;  %v203_v58 = vxor.u32 %v201_v50, %v199_v42  ;;  %v204_v59 = vxor.u32 %v202_v51, %v200_v43  ;;  %s348_s13 = sshrl.u32 %s347_s12, 16  ;;  %p451_p11 = por %p450_p10, %p449_p9 }
  0x4a   :  { %v236_v61 = vshrl.u32 %v234_v52, 15  ;;  %v237_v62 = vshrl.u32 %v235_v55, 15  ;;  %v310_v3 = vadd.s32 %v309_v60, %v511_v7  ;;  %v311_v4 = vadd.s32 %v309_v60, %v513_v8  ;;  %s349_s14 = sxor.u32 %s348_s13, %s347_s12 }
  0x4b   :  { %v273_v63 = vxor.u32 %v271_v56, %v269_v44  ;;  %v274_v0 = vxor.u32 %v272_v57, %v270_v45  ;;  %v205_v1 = vshrl.u32 %v203_v58, 8  ;;  %v206_v2 = vshrl.u32 %v204_v59, 8  ;;  %p452_p12 = pnand %p451_p11, %p445_p8 }
  0x4c   :  { %v238_v5 = vxor.u32 %v236_v61, %v234_v52  ;;  %v239_v6 = vxor.u32 %v237_v62, %v235_v55  ;;  %v312_v11 = vshrl.u32 %v310_v3, 16  ;;  %v313_v12 = vshrl.u32 %v311_v4, 16 }
  0x4d   :  { %v275_v9 = vmul.u32 2146121005, %v273_v63  ;;  %v276_v10 = vmul.u32 2146121005, %v274_v0  ;;  %vm207_vm6 = vcmp.lt.s32.totalorder %v205_v1, %v530_v53  ;;  %vm208_vm7 = vcmp.lt.s32.totalorder %v206_v2, %v532_v54 }
  0x4e   :  { %v403_v13 = vsel %vm207_vm6, 1.0, %v471_v21  ;;  %v404_v14 = vsel %vm208_vm7, 1.0, %v471_v21  ;;  %v240_v15 = vmul.u32 2221713035, %v238_v5  ;;  %v241_v16 = vmul.u32 2221713035, %v239_v6 }
  0x4f   :  { %214 = vst [vmem:[#allocation7 + $0x30] sm:$0xff] %v403_v13  ;;  %215 = vst [vmem:[#allocation7 + $0x38] sm:$0xff] %v404_v14  ;;  %v277_v17 = vshrl.u32 %v275_v9, 15  ;;  %v278_v18 = vshrl.u32 %v276_v10, 15  ;;  %v314_v19 = vxor.u32 %v312_v11, %v310_v3  ;;  %v315_v20 = vxor.u32 %v313_v12, %v311_v4 }
  0x50   :  { %v242_v22 = vshrl.u32 %v240_v15, 16  ;;  %v243_v23 = vshrl.u32 %v241_v16, 16  ;;  %v350_v24 = vstv %s349_s14 }
  0x51   :  { %v279_v25 = vxor.u32 %v277_v17, %v275_v9  ;;  %v280_v26 = vxor.u32 %v278_v18, %v276_v10  ;;  %v316_v27 = vmul.u32 2146121005, %v314_v19  ;;  %v317_v28 = vmul.u32 2146121005, %v315_v20 }
  0x52   :  { %v244_v29 = vxor.u32 %v242_v22, %v240_v15  ;;  %v245_v30 = vxor.u32 %v243_v23, %v241_v16  ;;  %v351_v31 = vadd.s32 %v350_v24, %v511_v7  ;;  %v352_v32 = vadd.s32 %v350_v24, %v513_v8 }
  0x53   :  { %v281_v33 = vmul.u32 2221713035, %v279_v25  ;;  %v282_v34 = vmul.u32 2221713035, %v280_v26  ;;  %v318_v35 = vshrl.u32 %v316_v27, 15  ;;  %v319_v36 = vshrl.u32 %v317_v28, 15 }
  0x54   :  { %v246_v37 = vshrl.u32 %v244_v29, 8  ;;  %v247_v38 = vshrl.u32 %v245_v30, 8  ;;  %v353_v39 = vshrl.u32 %v351_v31, 16  ;;  %v354_v40 = vshrl.u32 %v352_v32, 16 }
  0x55   :  { %v283_v41 = vshrl.u32 %v281_v33, 16  ;;  %v284_v42 = vshrl.u32 %v282_v34, 16  ;;  %v320_v43 = vxor.u32 %v318_v35, %v316_v27  ;;  %v321_v44 = vxor.u32 %v319_v36, %v317_v28 }
  0x56   :  { %vm248_vm8 = vcmp.lt.s32.totalorder %v246_v37, %v530_v53  ;;  %vm249_vm9 = vcmp.lt.s32.totalorder %v247_v38, %v532_v54  ;;  %v355_v45 = vxor.u32 %v353_v39, %v351_v31  ;;  %v356_v7 = vxor.u32 %v354_v40, %v352_v32 }
  0x57   :  { %v405_v8 = vsel %vm248_vm8, 1.0, %v471_v21  ;;  %v406_v46 = vsel %vm249_vm9, 1.0, %v471_v21  ;;  %v285_v47 = vxor.u32 %v283_v41, %v281_v33  ;;  %v286_v48 = vxor.u32 %v284_v42, %v282_v34 }
  0x58   :  { %255 = vst [vmem:[#allocation7 + $0x40] sm:$0xff] %v405_v8  ;;  %256 = vst [vmem:[#allocation7 + $0x48] sm:$0xff] %v406_v46  ;;  %v322_v49 = vmul.u32 2221713035, %v320_v43  ;;  %v323_v50 = vmul.u32 2221713035, %v321_v44 }
  0x59   :  { %v287_v51 = vshrl.u32 %v285_v47, 8  ;;  %v288_v52 = vshrl.u32 %v286_v48, 8  ;;  %v357_v55 = vmul.u32 2146121005, %v355_v45  ;;  %v358_v56 = vmul.u32 2146121005, %v356_v7 }
  0x5a   :  { %v324_v57 = vshrl.u32 %v322_v49, 16  ;;  %v325_v58 = vshrl.u32 %v323_v50, 16 }
  0x5b   :  { %vm289_vm10 = vcmp.lt.s32.totalorder %v287_v51, %v530_v53  ;;  %vm290_vm11 = vcmp.lt.s32.totalorder %v288_v52, %v532_v54  ;;  %v359_v59 = vshrl.u32 %v357_v55, 15  ;;  %v360_v60 = vshrl.u32 %v358_v56, 15 }
  0x5c   :  { %v407_v61 = vsel %vm289_vm10, 1.0, %v471_v21  ;;  %v408_v62 = vsel %vm290_vm11, 1.0, %v471_v21  ;;  %v326_v63 = vxor.u32 %v324_v57, %v322_v49  ;;  %v327_v0 = vxor.u32 %v325_v58, %v323_v50 }
  0x5d   :  { %296 = vst [vmem:[#allocation7 + $0x50] sm:$0xff] %v407_v61  ;;  %297 = vst [vmem:[#allocation7 + $0x58] sm:$0xff] %v408_v62  ;;  %v361_v1 = vxor.u32 %v359_v59, %v357_v55  ;;  %v362_v2 = vxor.u32 %v360_v60, %v358_v56 }
  0x5e   :  { %v328_v3 = vshrl.u32 %v326_v63, 8  ;;  %v329_v4 = vshrl.u32 %v327_v0, 8 }
  0x5f   :  { %v363_v5 = vmul.u32 2221713035, %v361_v1  ;;  %v364_v6 = vmul.u32 2221713035, %v362_v2 }
  0x60   :  { %vm330_vm12 = vcmp.lt.s32.totalorder %v328_v3, %v530_v53  ;;  %vm331_vm13 = vcmp.lt.s32.totalorder %v329_v4, %v532_v54 }
  0x61   :  { %v409_v9 = vsel %vm330_vm12, 1.0, %v471_v21  ;;  %v410_v10 = vsel %vm331_vm13, 1.0, %v471_v21  ;;  %v365_v11 = vshrl.u32 %v363_v5, 16  ;;  %v366_v12 = vshrl.u32 %v364_v6, 16 }
  0x62   :  { %337 = vst [vmem:[#allocation7 + $0x60] sm:$0xff] %v409_v9  ;;  %338 = vst [vmem:[#allocation7 + $0x68] sm:$0xff] %v410_v10 }
  0x63   :  { %v367_v13 = vxor.u32 %v365_v11, %v363_v5  ;;  %v368_v14 = vxor.u32 %v366_v12, %v364_v6 }
  0x65   :  { %v369_v15 = vshrl.u32 %v367_v13, 8  ;;  %v370_v16 = vshrl.u32 %v368_v14, 8 }
  0x67   :  { %vm371_vm14 = vcmp.lt.s32.totalorder %v369_v15, %v530_v53  ;;  %vm372_vm15 = vcmp.lt.s32.totalorder %v370_v16, %v532_v54 }
  0x68   :  { %v411_v17 = vsel %vm371_vm14, 1.0, %v471_v21  ;;  %v412_v18 = vsel %vm372_vm15, 1.0, %v471_v21 }
  0x69   :  { %378 = vst [vmem:[#allocation7 + $0x70] sm:$0xff] %v411_v17  ;;  %379 = vst [vmem:[#allocation7 + $0x78] sm:$0xff] %v412_v18 }
  0x6a   :  { %455 = shalt.err (!%p452_p12)
}
  0x6b   :  { %s456_s20 = scalar_lea.hbm %s616_s2, 2048 }
  0x6c   :  { %p457_p13 = scmp.ne.s32.totalorder %s616_s2, %s456_s20  ;;  %p460_p0 = scmp.lt.u32.totalorder %s456_s20, %s616_s2 }
  0x6e   :  { %p462_p1 = pnand %p460_p0, %p457_p13 }
  0x70   :  { %465 = shalt.err (!%p462_p1)
}
  0x71   :  { %s473_s25 = smov 256   ;;  %s474_s26 = smov 16  }
  0x72   :  { %391 = dma.vmem_to_hbm [thread:$0]  %s386_s16, 2048, %s616_s2, [#allocation6], %s473_s25, %s473_s25, %s474_s26  }
  0x73   :  { %468 = dma.done.wait [#allocation6], 2048  }
  0x74   :  { %469 = vsyncadd [#allocation6], 4294965248 }
  0x75   :  { %395 = vsyncpa [#allocation5], 1 }
  0x76   :  { %396 = vsyncpa [#allocation6], 1 }

</bundles_post_ra>
